<compile_context>
chip_gen: v6e
topology: v6e:2x2x1
jax: 0.10.0
libtpu: 0.0.40
codegen_flags: <defaults>
</compile_context>

<pallas_src>
import functools

import jax
import jax.numpy as jnp
from jax import lax
from jax.experimental import pallas as pl
from jax.experimental.pallas import tpu as pltpu

FPN_CHANNELS = 256   # torchvision FPN out_channels -> feeds nn.Linear(256, hidden)
HIDDEN_DIM = 32      # Imagecoder hidden_dim
OUT_PAD = 128        # hidden padded to a lane-dense 128-wide store
CAT_CH = 64          # 24 + 32 backbone channels padded up to 64 lanes


# ----------------------------------------------------------------------------
# Fused Pallas kernel
#   per HW tile : [feat0|feat1] = f_tile @ W_lat + b_lat   (one block-diag MXU matmul)
#                 prod = feat0 * feat1                     (multiscale `x *= val`)
#                 acc += rowgroup_sum(prod)                (f32 VMEM accumulator, VPU only)
#   last tile   : pooled = (sum - pad_correction) / HW -> Linear(256,hidden) -> ReLU
# ----------------------------------------------------------------------------
def _fused_head_kernel(f_ref, wl_ref, bl_ref, wp_ref, bp_ref, o_ref, acc_ref,
                       *, hw, n_pad_rows, tile):
    t = pl.program_id(1)

    @pl.when(t == 0)
    def _init():
        acc_ref[...] = jnp.zeros_like(acc_ref)

    # (tile, 64) bf16 @ (64, 512) bf16 -> (tile, 512) f32 on the MXU
    lat = jnp.dot(f_ref[...], wl_ref[...], preferred_element_type=jnp.float32)
    lat = lat + bl_ref[...]                              # lateral conv biases
    prod = lat[:, :FPN_CHANNELS] * lat[:, FPN_CHANNELS:]  # multiscale fuse (lane-aligned split)

    # Sum groups of 8 rows with full-vreg VPU adds; defer the cross-sublane (XLU)
    # reduction to the finalize step.  Reshape only splits the sublane dim (no relayout).
    acc_ref[...] += jnp.sum(prod.reshape(tile // 8, 8, FPN_CHANNELS), axis=0)

    @pl.when(t == pl.num_programs(1) - 1)
    def _finalize():
        total = jnp.sum(acc_ref[...], axis=0, keepdims=True)          # (1, 256)
        if n_pad_rows:
            # zero-padded HW rows produce exactly (b0 * b1) per channel; subtract them.
            pad_term = bl_ref[:, :FPN_CHANNELS] * bl_ref[:, FPN_CHANNELS:]
            total = total - float(n_pad_rows) * pad_term
        pooled = total * (1.0 / float(hw))                # AdaptiveAvgPool2d(1) + squeeze
        # dropout: identity in eval mode
        y = jnp.dot(pooled, wp_ref[...],
                    preferred_element_type=jnp.float32) + bp_ref[...]
        o_ref[...] = jnp.maximum(y, 0.0).astype(o_ref.dtype)   # ReLU (padding lanes stay 0)


def _pick_hw_tile(hw):
    # biggest tile up to 1024 rows, multiple of 8 (sublane aligned); keeps VMEM tiny
    hw8 = ((hw + 7) // 8) * 8
    return min(1024, hw8)


def fused_fpn_head(fcat_bf16, w_lat, b_lat, w_proj_pad, b_proj_pad, *, hw, tile):
    n, hw_pad, cin = fcat_bf16.shape
    num_tiles = hw_pad // tile
    n_pad_rows = hw_pad - hw

    out = pl.pallas_call(
        functools.partial(_fused_head_kernel, hw=hw, n_pad_rows=n_pad_rows, tile=tile),
        out_shape=jax.ShapeDtypeStruct((n, 1, OUT_PAD), jnp.float32),
        grid_spec=pltpu.PrefetchScalarGridSpec(
            num_scalar_prefetch=0,
            grid=(n, num_tiles),
            in_specs=[
                pl.BlockSpec((pl.Squeezed(), tile, cin), lambda b, t: (b, t, 0)),
                pl.BlockSpec((cin, 2 * FPN_CHANNELS), lambda b, t: (0, 0)),
                pl.BlockSpec((1, 2 * FPN_CHANNELS), lambda b, t: (0, 0)),
                pl.BlockSpec((FPN_CHANNELS, OUT_PAD), lambda b, t: (0, 0)),
                pl.BlockSpec((1, OUT_PAD), lambda b, t: (0, 0)),
            ],
            out_specs=pl.BlockSpec((pl.Squeezed(), 1, OUT_PAD), lambda b, t: (b, 0, 0)),
            scratch_shapes=[pltpu.VMEM((8, FPN_CHANNELS), jnp.float32)],
        ),
        compiler_params=pltpu.CompilerParams(
            dimension_semantics=("parallel", "arbitrary"),
        ),
    )(fcat_bf16, w_lat, b_lat, w_proj_pad, b_proj_pad)
    return out[:, 0, :HIDDEN_DIM]


# ----------------------------------------------------------------------------
# Plain-JAX glue: small deterministic conv trunk standing in for the frozen
# MobileNetV3-Large backbone (pretrained weights cannot be reproduced in-script).
# ----------------------------------------------------------------------------
# TODO(synk): the full pretrained MobileNetV3-Large trunk is approximated by a small
# deterministic conv stack producing two same-resolution feature levels; the FPN
# laterals + multiscale fuse / avgpool / project / relu head (the module's explicit
# forward) run fused in one Pallas call.
def _conv2d(x, w, stride):
    return lax.conv_general_dilated(
        x, w, window_strides=(stride, stride), padding="SAME",
        dimension_numbers=("NCHW", "OIHW", "NCHW"))


def _nchw_to_flat(x):
    n, c, h, w = x.shape
    return jnp.transpose(x, (0, 2, 3, 1)).reshape(n, h * w, c)


def init_params(key):
    ks = jax.random.split(key, 8)

    def w_init(k, shape, fan_in):
        return jax.random.normal(k, shape, jnp.float32) / jnp.sqrt(float(fan_in))

    p = {}
    # synthetic trunk (NCHW / OIHW)
    p["wa"] = w_init(ks[0], (16, 3, 3, 3), 3 * 9);   p["ba"] = jnp.zeros((16,), jnp.float32)
    p["wb"] = w_init(ks[1], (24, 16, 3, 3), 16 * 9); p["bb"] = jnp.zeros((24,), jnp.float32)
    p["wc"] = w_init(ks[2], (32, 24, 3, 3), 24 * 9); p["bc"] = jnp.zeros((32,), jnp.float32)

    # FPN lateral 1x1 convs -> 256 channels each
    wl0 = w_init(ks[3], (24, FPN_CHANNELS), 24)
    wl1 = w_init(ks[4], (32, FPN_CHANNELS), 32)
    bl0 = 0.01 * jax.random.normal(ks[7], (1, FPN_CHANNELS), jnp.float32)
    bl1 = jnp.zeros((1, FPN_CHANNELS), jnp.float32)
    # block-diagonal fused lateral weight: channels [0:24]->feat0 lanes, [24:56]->feat1 lanes
    w_lat = jnp.zeros((CAT_CH, 2 * FPN_CHANNELS), jnp.float32)
    w_lat = w_lat.at[:24, :FPN_CHANNELS].set(wl0)
    w_lat = w_lat.at[24:56, FPN_CHANNELS:].set(wl1)
    p["w_lat"] = w_lat.astype(jnp.bfloat16)               # bf16 MXU operand
    p["b_lat"] = jnp.concatenate([bl0, bl1], axis=1)       # (1, 512) f32

    # projection Linear(256, hidden_dim), padded to 128 lanes for an unmasked lane-dense store
    wp = w_init(ks[5], (FPN_CHANNELS, HIDDEN_DIM), FPN_CHANNELS)
    bp = 0.01 * jax.random.normal(ks[6], (1, HIDDEN_DIM), jnp.float32)
    p["w_proj_pad"] = jnp.zeros((FPN_CHANNELS, OUT_PAD), jnp.float32).at[:, :HIDDEN_DIM].set(wp)
    p["b_proj_pad"] = jnp.zeros((1, OUT_PAD), jnp.float32).at[:, :HIDDEN_DIM].set(bp)
    return p


@jax.jit
def imagecoder_forward(x, params):
    # trunk (stand-in for self.model's MobileNetV3 feature extractor)
    a = jax.nn.relu(_conv2d(x, params["wa"], 2) + params["ba"][None, :, None, None])
    b = jax.nn.relu(_conv2d(a, params["wb"], 2) + params["bb"][None, :, None, None])
    c = jax.nn.relu(_conv2d(b, params["wc"], 1) + params["bc"][None, :, None, None])

    fb = _nchw_to_flat(b)   # (N, HW, 24)  -- FPN input level '0'
    fc = _nchw_to_flat(c)   # (N, HW, 32)  -- FPN input level '1' (same spatial size)

    n, hw, _ = fb.shape
    tile = _pick_hw_tile(hw)
    hw_pad = pl.cdiv(hw, tile) * tile

    # concat channels (24+32=56), pad to 64 lanes and HW to a tile multiple; cast bf16
    fcat = jnp.concatenate([fb, fc], axis=-1)
    fcat = jnp.pad(fcat, ((0, 0), (0, hw_pad - hw), (0, CAT_CH - 56)))
    fcat = fcat.astype(jnp.bfloat16)

    # single fused Pallas kernel: laterals -> multiscale product -> avgpool(1)
    # -> [dropout eval identity] -> Linear(256, hidden) -> ReLU
    return fused_fpn_head(fcat, params["w_lat"], params["b_lat"],
                          params["w_proj_pad"], params["b_proj_pad"],
                          hw=hw, tile=tile)   # (N, hidden)


if __name__ == "__main__":
    key = jax.random.PRNGKey(0)
    kp, kx = jax.random.split(key)
    params = init_params(kp)
    x = jax.random.normal(kx, (2, 3, 32, 32), jnp.float32)   # NCHW image batch

    out = imagecoder_forward(x, params)
    out = jax.block_until_ready(out)

    assert out.shape == (2, HIDDEN_DIM), out.shape
    assert bool(jnp.all(jnp.isfinite(out)))
    assert bool(jnp.all(out >= 0.0))   # post-ReLU
    print("KERNEL_OK")
</pallas_src>

<mosaic_0001>
module attributes {stable_mosaic.version = 11 : i64} {
  func.func @_fused_head_kernel(%arg0: i32, %arg1: i32, %arg2: memref<1x64x64xbf16, #tpu.memory_space<vmem>>, %arg3: memref<64x512xbf16, #tpu.memory_space<vmem>>, %arg4: memref<1x512xf32, #tpu.memory_space<vmem>>, %arg5: memref<256x128xf32, #tpu.memory_space<vmem>>, %arg6: memref<1x128xf32, #tpu.memory_space<vmem>>, %arg7: memref<1x1x128xf32, #tpu.memory_space<vmem>>, %arg8: memref<8x256xf32, #tpu.memory_space<vmem>>) attributes {dimension_semantics = [#tpu.dimension_semantics<parallel>, #tpu.dimension_semantics<arbitrary>], iteration_bounds = array<i64: 2, 1>, scalar_prefetch = 0 : i64, scratch_operands = 1 : i64, tpu.core_type = #tpu.core_type<tc>, window_params = [{transform_indices = @transform_0, window_bounds = array<i64: 1, 64, 64>}, {pipeline_mode = #tpu.pipeline_mode<synchronous>, transform_indices = @transform_1, window_bounds = array<i64: 64, 512>}, {pipeline_mode = #tpu.pipeline_mode<synchronous>, transform_indices = @transform_2, window_bounds = array<i64: 1, 512>}, {pipeline_mode = #tpu.pipeline_mode<synchronous>, transform_indices = @transform_3, window_bounds = array<i64: 256, 128>}, {pipeline_mode = #tpu.pipeline_mode<synchronous>, transform_indices = @transform_4, window_bounds = array<i64: 1, 128>}, {transform_indices = @transform_5, window_bounds = array<i64: 1, 1, 128>}]} {
    %c0_i32 = arith.constant 0 : i32
    %0 = arith.cmpi eq, %arg1, %c0_i32 : i32
    %1 = arith.extui %0 : i1 to i32
    %c0_i32_0 = arith.constant 0 : i32
    %2 = arith.cmpi ne, %1, %c0_i32_0 : i32
    scf.if %2 {
      %cst_14 = arith.constant 0.000000e+00 : f32
      %21 = vector.broadcast %cst_14 : f32 to vector<8x256xf32>
      %c0_15 = arith.constant 0 : index
      %c0_16 = arith.constant 0 : index
      %22 = vector.load %arg8[%c0_15, %c0_16] : memref<8x256xf32, #tpu.memory_space<vmem>>, vector<8x256xf32>
      tpu.vector_store %arg8[%c0_15, %c0_16], %21 {strides = array<i32>} : memref<8x256xf32, #tpu.memory_space<vmem>>, vector<8x256xf32>,
    } else {
    }
    %c0 = arith.constant 0 : index
    %c0_1 = arith.constant 0 : index
    %c0_2 = arith.constant 0 : index
    %3 = vector.load %arg2[%c0, %c0_1, %c0_2] : memref<1x64x64xbf16, #tpu.memory_space<vmem>>, vector<1x64x64xbf16>
    %4 = vector.shape_cast %3 : vector<1x64x64xbf16> to vector<64x64xbf16>
    %c0_3 = arith.constant 0 : index
    %c0_4 = arith.constant 0 : index
    %5 = vector.load %arg3[%c0_3, %c0_4] : memref<64x512xbf16, #tpu.memory_space<vmem>>, vector<64x512xbf16>
    %cst = arith.constant dense<0.000000e+00> : vector<64x512xf32>
    %6 = tpu.matmul %4, %5, %cst {dimension_numbers = #tpu.dot_dimension_numbers<[1], [0], [0], [1], [0, 0, 1, 1], [], []>} : vector<64x64xbf16>, vector<64x512xbf16>, vector<64x512xf32> -> vector<64x512xf32>
    %c0_5 = arith.constant 0 : index
    %c0_6 = arith.constant 0 : index
    %7 = vector.load %arg4[%c0_5, %c0_6] : memref<1x512xf32, #tpu.memory_space<vmem>>, vector<1x512xf32>
    %8 = vector.broadcast %7 : vector<1x512xf32> to vector<64x512xf32>
    %9 = arith.addf %6, %8 : vector<64x512xf32>
    %10 = vector.extract_strided_slice %9 {offsets = [0, 0], sizes = [64, 256], strides = [1, 1]} : vector<64x512xf32> to vector<64x256xf32>
    %11 = vector.extract_strided_slice %9 {offsets = [0, 256], sizes = [64, 256], strides = [1, 1]} : vector<64x512xf32> to vector<64x256xf32>
    %12 = arith.mulf %10, %11 : vector<64x256xf32>
    %c0_7 = arith.constant 0 : index
    %c0_8 = arith.constant 0 : index
    %13 = vector.load %arg8[%c0_7, %c0_8] : memref<8x256xf32, #tpu.memory_space<vmem>>, vector<8x256xf32>
    %14 = vector.shape_cast %12 : vector<64x256xf32> to vector<8x8x256xf32>
    %cst_9 = arith.constant dense<0.000000e+00> : vector<8x256xf32>
    %15 = vector.multi_reduction <add>, %14, %cst_9 [0] : vector<8x8x256xf32> to vector<8x256xf32>
    %16 = arith.addf %13, %15 : vector<8x256xf32>
    %c0_10 = arith.constant 0 : index
    %c0_11 = arith.constant 0 : index
    %17 = vector.load %arg8[%c0_10, %c0_11] : memref<8x256xf32, #tpu.memory_space<vmem>>, vector<8x256xf32>
    tpu.vector_store %arg8[%c0_10, %c0_11], %16 {strides = array<i32>} : memref<8x256xf32, #tpu.memory_space<vmem>>, vector<8x256xf32>,
    %c0_i32_12 = arith.constant 0 : i32
    %18 = arith.cmpi eq, %arg1, %c0_i32_12 : i32
    %19 = arith.extui %18 : i1 to i32
    %c0_i32_13 = arith.constant 0 : i32
    %20 = arith.cmpi ne, %19, %c0_i32_13 : i32
    scf.if %20 {
      %c0_14 = arith.constant 0 : index
      %c0_15 = arith.constant 0 : index
      %21 = vector.load %arg8[%c0_14, %c0_15] : memref<8x256xf32, #tpu.memory_space<vmem>>, vector<8x256xf32>
      %cst_16 = arith.constant dense<0.000000e+00> : vector<256xf32>
      %22 = vector.multi_reduction <add>, %21, %cst_16 [0] : vector<8x256xf32> to vector<256xf32>
      %23 = vector.shape_cast %22 : vector<256xf32> to vector<1x256xf32>
      %cst_17 = arith.constant 1.562500e-02 : f32
      %24 = vector.broadcast %cst_17 : f32 to vector<1x256xf32>
      %25 = arith.mulf %23, %24 : vector<1x256xf32>
      %c0_18 = arith.constant 0 : index
      %c0_19 = arith.constant 0 : index
      %26 = vector.load %arg5[%c0_18, %c0_19] : memref<256x128xf32, #tpu.memory_space<vmem>>, vector<256x128xf32>
      %cst_20 = arith.constant dense<0.000000e+00> : vector<1x128xf32>
      %27 = tpu.matmul %25, %26, %cst_20 {dimension_numbers = #tpu.dot_dimension_numbers<[1], [0], [0], [1], [0, 0, 1, 1], [], []>} : vector<1x256xf32>, vector<256x128xf32>, vector<1x128xf32> -> vector<1x128xf32>
      %c0_21 = arith.constant 0 : index
      %c0_22 = arith.constant 0 : index
      %28 = vector.load %arg6[%c0_21, %c0_22] : memref<1x128xf32, #tpu.memory_space<vmem>>, vector<1x128xf32>
      %29 = arith.addf %27, %28 : vector<1x128xf32>
      %cst_23 = arith.constant 0.000000e+00 : f32
      %30 = vector.broadcast %cst_23 : f32 to vector<1x128xf32>
      %31 = arith.maximumf %29, %30 : vector<1x128xf32>
      %c0_24 = arith.constant 0 : index
      %c0_25 = arith.constant 0 : index
      %c0_26 = arith.constant 0 : index
      %32 = vector.load %arg7[%c0_24, %c0_25, %c0_26] : memref<1x1x128xf32, #tpu.memory_space<vmem>>, vector<1x1x128xf32>
      %33 = vector.shape_cast %32 : vector<1x1x128xf32> to vector<1x128xf32>
      %34 = vector.shape_cast %31 : vector<1x128xf32> to vector<1x1x128xf32>
      tpu.vector_store %arg7[%c0_24, %c0_25, %c0_26], %34 {strides = array<i32>} : memref<1x1x128xf32, #tpu.memory_space<vmem>>, vector<1x1x128xf32>,
    } else {
    }
    return
  }
  func.func @transform_0(%arg0: i32, %arg1: i32) -> (i32, i32, i32) {
    %c0_i32 = arith.constant 0 : i32
    %c0_i32_0 = arith.constant 0 : i32
    return %arg0, %arg1, %c0_i32 : i32, i32, i32
  }
  func.func @transform_1(%arg0: i32, %arg1: i32) -> (i32, i32) {
    %c0_i32 = arith.constant 0 : i32
    %c0_i32_0 = arith.constant 0 : i32
    %c0_i32_1 = arith.constant 0 : i32
    return %c0_i32, %c0_i32_0 : i32, i32
  }
  func.func @transform_2(%arg0: i32, %arg1: i32) -> (i32, i32) {
    %c0_i32 = arith.constant 0 : i32
    %c0_i32_0 = arith.constant 0 : i32
    %c0_i32_1 = arith.constant 0 : i32
    return %c0_i32, %c0_i32_0 : i32, i32
  }
  func.func @transform_3(%arg0: i32, %arg1: i32) -> (i32, i32) {
    %c0_i32 = arith.constant 0 : i32
    %c0_i32_0 = arith.constant 0 : i32
    %c0_i32_1 = arith.constant 0 : i32
    return %c0_i32, %c0_i32_0 : i32, i32
  }
  func.func @transform_4(%arg0: i32, %arg1: i32) -> (i32, i32) {
    %c0_i32 = arith.constant 0 : i32
    %c0_i32_0 = arith.constant 0 : i32
    %c0_i32_1 = arith.constant 0 : i32
    return %c0_i32, %c0_i32_0 : i32, i32
  }
  func.func @transform_5(%arg0: i32, %arg1: i32) -> (i32, i32, i32) {
    %c0_i32 = arith.constant 0 : i32
    %c0_i32_0 = arith.constant 0 : i32
    %c0_i32_1 = arith.constant 0 : i32
    return %arg0, %c0_i32, %c0_i32_0 : i32, i32, i32
  }
}

</mosaic_0001>

<bundles_post_ra>
// kernel: imagecoder_forward.1
= control target key start
LH: loop header
LB: loop body
LE: loop exit
PB: predicated region body
PF: predicated region fallthrough
CT: control target
= control target key end

     0   :  { %10 = vsyncpa [#allocation4], 0  ;;  %s1369_s0 = inlined_call_operand.vmem [shape: bf16[2,64,64], index: 0, kind: input, shape index: {}]   ;;  %s1370_s1 = inlined_call_operand.vmem [shape: bf16[64,512], index: 1, kind: input, shape index: {}]   ;;  %s1371_s2 = inlined_call_operand.vmem [shape: f32[1,512], index: 2, kind: input, shape index: {}]   ;;  %s1372_s3 = inlined_call_operand.vmem [shape: f32[256,128], index: 3, kind: input, shape index: {}]   ;;  %s1373_s4 = inlined_call_operand.vmem [shape: f32[1,128], index: 4, kind: input, shape index: {}]   ;;  %s1374_s5 = inlined_call_operand.hbm [shape: f32[2,1,128], index: 5, kind: output, shape index: {}]  }
   0x1   :  { %12 = vsyncpa [#allocation4 + $0x1], 0  ;;  %s1072_s18 = smov 0   ;;  %s1074_s19 = smov 0  }
   0x2   :  { %s1076_s20 = smov 0   ;;  %s1078_s21 = smov 0  }
   0x3   :  { %s1080_s22 = smov 0   ;;  %s1082_s23 = smov 0  }
   0x4 LB: > { %s804_s24 = sadd.s32 4294967295, %s1038_s23   ;;  %s805_s25 = sadd.s32 4294967294, %s1038_s23   ;;  %s1038_s23 = sphi %s1082_s23, %s18_s23   ;;  %s1034_s22 = sphi %s1080_s22, %s1381_s22   ;;  %s1030_s21 = sphi %s1078_s21, %s1380_s21   ;;  %s1026_s20 = sphi %s1076_s20, %s1379_s20   ;;  %s1022_s19 = sphi %s1074_s19, %s1378_s19   ;;  %s1018_s18 = sphi %s1072_s18, %s1377_s18  }
   0x5   : > { %s30_s26 = sadd.s32 1, %s1034_s22  ;;  %s149_s27 = sadd.s32 1, %s1026_s20 }
   0x6   : > { %p32_p0 = scmp.ge.s32.totalorder %s30_s26, 2  ;;  %p159_p1 = scmp.ne.s32.totalorder %s1026_s20, %s1022_s19 }
   0x7   : > { %p160_p2 = scmp.eq.s32.totalorder %s804_s24, 1  ;;  %p165_p3 = scmp.ne.s32.totalorder %s1022_s19, %s1018_s18 }
   0x8   : > { %s1383_s26 = smov (%p32_p0, %s30_s26), 0  ;;  %p166_p5 = scmp.eq.s32.totalorder %s805_s25, 1 }
   0x9   : > { %p1112_p4 = por %p160_p2, %p159_p1  ;;  %s146_s29 = ssub.s32 %s1034_s22, %s1383_s26 }
   0xa   : > { %p808_p6 = scmp.ge.s32.totalorder %s1038_s23, 1  ;;  %p147_p7 = scmp.eq.s32.totalorder %s146_s29, 0 }
   0xb   : > { %p1119_p8 = por %p166_p5, %p165_p3  ;;  %p209_p9 = scmp.lt.s32.totalorder %s1038_s23, 3 }
   0xc   : > { %s1125_s6 = scalar_select %p147_p7, %s1026_s20, %s149_s27  }
   0xd   : > { %p210_p10 = pnand %p808_p6, %p209_p9 }
   0xe   : > { %p241_p11 = scmp.lt.s32.totalorder (!%p210_p10), %s1030_s21, 1  ;;  %s839_s8 = sshll.u32 (!%p210_p10), %s1030_s21, 4 }
   0xf   : > { %213 = sbr.rel (%p210_p10) target bundleno = 496 (0x1f0), region = 40  ;;  %s733_s14 = scalar_lea.hbm (!%p210_p10), %s1374_s5, %s839_s8 }
  0x10   : > { %s1041_s17 = smov (!%p210_p10), [#allocation3]  }
  0x11   : > { %s966_s24 = sshll.u32 (!%p210_p10), %s1041_s17, 4  ;;  %s967_s24 = int_to_ptr.vmem [resolvable:$false] %s966_s24 }
  0x14   : > { %v934_v0 = vld [vmem:[%s1370_s1 + $0x64] ss:$16 sps:$4 sm:$0xff]   ;;  %v936_v1 = vld [vmem:[%s1370_s1 + $0x6c] ss:$16 sps:$4 sm:$0xff]   ;;  %v1040_v2 = vmov 0   ;;  %s242_s15 = scalar_select %p241_p11, %s1030_s21, 1  ;;  %v283_v53 = vlaneseq }
  0x15   : > { %448 = vmatprep.mubr.bf16.mxu0 %v1040_v2  ;;  %521 = vmatprep.mubr.bf16.mxu1 %v1040_v2  ;;  %v938_v3 = vld [vmem:[%s1370_s1 + $0x60] ss:$16 sps:$4 sm:$0xff]   ;;  %v939_v4 = vld [vmem:[%s1370_s1 + $0x68] ss:$16 sps:$4 sm:$0xff]   ;;  %v940_v5 = vld [vmem:[%s1370_s1 + $0x44] ss:$16 sps:$4 sm:$0xff]  }
  0x16   : > { %424 = vmatprep.subr.bf16.mxu0 %v934_v0  ;;  %497 = vmatprep.subr.bf16.mxu1 %v936_v1  ;;  %v942_v6 = vld [vmem:[%s1370_s1 + $0x4c] ss:$16 sps:$4 sm:$0xff]   ;;  %v944_v7 = vld [vmem:[%s1370_s1 + $0x40] ss:$16 sps:$4 sm:$0xff]   ;;  %v945_v8 = vld [vmem:[%s1370_s1 + $0x48] ss:$16 sps:$4 sm:$0xff]  }
  0x17   : > { %425 = vmatpush1.bf16.msra.mxu0 %v938_v3  ;;  %498 = vmatpush1.bf16.msra.mxu1 %v939_v4  ;;  %v946_v9 = vld [vmem:[%s1370_s1 + $0x24] ss:$16 sps:$4 sm:$0xff]   ;;  %s842_s11 = sshll.u32 %s242_s15, 5  ;;  %v948_v10 = vld [vmem:[%s1370_s1 + $0x2c] ss:$16 sps:$4 sm:$0xff]   ;;  %vm403_vm0 = vcmask 523264  }
  0x18   : > { %426 = vmatprep.subr.bf16.mxu0 %v940_v5  ;;  %499 = vmatprep.subr.bf16.mxu1 %v942_v6  ;;  %v950_v11 = vld [vmem:[%s1370_s1 + $0x20] ss:$16 sps:$4 sm:$0xff]   ;;  %v951_v12 = vld [vmem:[%s1370_s1 + $0x28] ss:$16 sps:$4 sm:$0xff]   ;;  %v952_v13 = vld [vmem:[%s1370_s1 + $0x4] ss:$16 sps:$4 sm:$0xff]   ;;  %s248_s9 = scalar_lea.vmem %s1369_s0, %s842_s11 }
  0x19   : > { %v954_v14 = vld [vmem:[%s1370_s1 + $0xc] ss:$16 sps:$4 sm:$0xff]   ;;  %v956_v15 = vld [vmem:[%s1370_s1] ss:$16 sps:$4 sm:$0xff]   ;;  %v957_v16 = vld [vmem:[%s1370_s1 + $0x8] ss:$16 sps:$4 sm:$0xff]  }
  0x1a   : > { %v958_v17 = vld [vmem:[%s248_s9] sm:$0xff]   ;;  %v959_v18 = vld [vmem:[%s248_s9 + $0x8] sm:$0xff]   ;;  %v960_v19 = vld [vmem:[%s248_s9 + $0x10] sm:$0xff]   ;;  %v284_v58 = vshrl.u32 %v283_v53, 7  ;;  %s238_s15 = sand.u32 1, %s1022_s19   ;;  %s968_s21 = scalar_lea.vmem %s967_s24, 32 }
  0x1b   : > { %427 = vmatpush1.bf16.msra.mxu0 %v944_v7  ;;  %500 = vmatpush1.bf16.msra.mxu1 %v945_v8  ;;  %v961_v20 = vld [vmem:[%s248_s9 + $0x18] sm:$0xff]   ;;  %v647_v23 = vld [vmem:[%s1372_s3 + $0xf0] sm:$0xff]  ;;  %v646_v25 = vld [vmem:[%s1372_s3 + $0xe8] sm:$0xff]  ;;  %s239_s9 = scalar_lea.vmem [#allocation3], %s238_s15  ;;  %s723_s11 = scalar_lea.sflag [#allocation4], %s238_s15 }
  0x1c   : > { %428 = vmatprep.subr.bf16.mxu0 %v946_v9  ;;  %501 = vmatprep.subr.bf16.mxu1 %v948_v10  ;;  %v648_v21 = vld [vmem:[%s1372_s3 + $0xf8] sm:$0xff]  ;;  %v631_v24 = vld [vmem:[%s1372_s3 + $0x70] sm:$0xff]  ;;  %v630_v26 = vld [vmem:[%s1372_s3 + $0x68] sm:$0xff]  ;;  %v285_v63 = vsub.s32 0, %v284_v58  ;;  %v293_v0 = vsub.s32 2, %v284_v58  ;;  %v297_v3 = vsub.s32 3, %v284_v58 }
  0x1d   : > { %v632_v22 = vld [vmem:[%s1372_s3 + $0x78] sm:$0xff]  ;;  %v645_v27 = vld [vmem:[%s1372_s3 + $0xe0] sm:$0xff]  ;;  %v643_v31 = vld [vmem:[%s1372_s3 + $0xd0] sm:$0xff]  ;;  %s735_s10 = sshll.u32 %s239_s9, 4  ;;  %s736_s10 = int_to_ptr.vmem [resolvable:$true] %s735_s10 }
  0x1e   : > { %v629_v28 = vld [vmem:[%s1372_s3 + $0x60] sm:$0xff]  ;;  %v644_v29 = vld [vmem:[%s1372_s3 + $0xd8] sm:$0xff]  ;;  %v627_v32 = vld [vmem:[%s1372_s3 + $0x50] sm:$0xff]  ;;  %s962_s16 = scalar_lea.vmem %s736_s10, 16  ;;  %p969_p1 = scmp.lt.s32.totalorder %s736_s10, %s967_s24 }
  0x1f   : > { %429 = vmatpush1.bf16.msra.mxu0 %v950_v11  ;;  %502 = vmatpush1.bf16.msra.mxu1 %v951_v12  ;;  %v628_v30 = vld [vmem:[%s1372_s3 + $0x58] sm:$0xff]  ;;  %v642_v33 = vld [vmem:[%s1372_s3 + $0xc8] sm:$0xff]  ;;  %v641_v35 = vld [vmem:[%s1372_s3 + $0xc0] sm:$0xff]  ;;  %p963_p12 = scmp.ne.s32.totalorder %s736_s10, %s962_s16  ;;  %p970_p2 = scmp.lt.s32.totalorder %s968_s21, %s962_s16 }
  0x20   : > { %430 = vmatprep.subr.bf16.mxu0 %v952_v13  ;;  %503 = vmatprep.subr.bf16.mxu1 %v954_v14  ;;  %v626_v34 = vld [vmem:[%s1372_s3 + $0x48] sm:$0xff]  ;;  %v625_v36 = vld [vmem:[%s1372_s3 + $0x40] sm:$0xff]  ;;  %v640_v37 = vld [vmem:[%s1372_s3 + $0xb8] sm:$0xff] }
  0x21   : > { %v624_v38 = vld [vmem:[%s1372_s3 + $0x38] sm:$0xff]  ;;  %v639_v39 = vld [vmem:[%s1372_s3 + $0xb0] sm:$0xff]  ;;  %v638_v41 = vld [vmem:[%s1372_s3 + $0xa8] sm:$0xff]  ;;  %p964_p13 = pnand %p963_p12, %p1112_p4  ;;  %p971_p3 = por %p970_p2, %p969_p1 }
  0x22   : > { %v623_v40 = vld [vmem:[%s1372_s3 + $0x30] sm:$0xff]  ;;  %v622_v42 = vld [vmem:[%s1372_s3 + $0x28] sm:$0xff]  ;;  %v637_v43 = vld [vmem:[%s1372_s3 + $0xa0] sm:$0xff] }
  0x23   : > { %431 = vmatpush1.bf16.msra.mxu0 %v956_v15  ;;  %504 = vmatpush1.bf16.msra.mxu1 %v957_v16  ;;  %v621_v44 = vld [vmem:[%s1372_s3 + $0x20] sm:$0xff]  ;;  %v636_v45 = vld [vmem:[%s1372_s3 + $0x98] sm:$0xff]  ;;  %v635_v47 = vld [vmem:[%s1372_s3 + $0x90] sm:$0xff]  ;;  %p965_p0 = pneg %p964_p13 }
  0x24   : > { %843 = vmatprep.subr.mxu0 %v648_v21  ;;  %v620_v46 = vld [vmem:[%s1372_s3 + $0x18] sm:$0xff]  ;;  %v619_v48 = vld [vmem:[%s1372_s3 + $0x10] sm:$0xff]  ;;  %v634_v49 = vld [vmem:[%s1372_s3 + $0x88] sm:$0xff] }
  0x25   : > { %v618_v50 = vld [vmem:[%s1372_s3 + $0x8] sm:$0xff]  ;;  %v633_v51 = vld [vmem:[%s1372_s3 + $0x80] sm:$0xff]  ;;  %p972_p5 = pnand %p971_p3, %p965_p0 }
  0x26   : > { %831 = vmatmul.mubr.msk.bf16.vlgmr.msra.gmra.mxu0 %vm403_vm0, %v958_v17  ;;  %835 = vmatmul.mubr.msk.bf16.vlgmr.msra.gmra.mxu1 %vm403_vm0, %v958_v17  ;;  %v617_v52 = vld [vmem:[%s1372_s3] sm:$0xff] }
  0x27   : > { %458 = vmatprep.mubr.bf16.mxu0 %v1040_v2  ;;  %531 = vmatprep.mubr.bf16.mxu1 %v1040_v2  ;;  %v281_v1 = vld [vmem:[%s1371_s2] sm:$0xf] }
  0x28   : > { %844 = vmatpush3.msra.mxu0 %v632_v22  ;;  %v1287_v8 = vrot.slane %v281_v1, %v285_v63  ;;  %v1289_v9 = vrot.slane %v281_v1, %v293_v0  ;;  %v1293_v11 = vrot.slane %v281_v1, %v297_v3 }
  0x29   : > { %845 = vmatprep.subr.mxu0 %v647_v23 }
  0x2a   : > { %846 = vmatpush3.msra.mxu0 %v631_v24 }
  0x2b   : > { %847 = vmatprep.subr.mxu0 %v646_v25 }
  0x2c   : > { %848 = vmatpush3.msra.mxu0 %v630_v26 }
  0x2d   : > { %849 = vmatprep.subr.mxu0 %v645_v27 }
  0x2e   : > { %832 = vmatmul.mubr.msk.bf16.gmra.mxu0 %vm403_vm0, %v959_v18  ;;  %836 = vmatmul.mubr.msk.bf16.gmra.mxu1 %vm403_vm0, %v959_v18 }
  0x2f   : > { %468 = vmatprep.mubr.bf16.mxu0 %v1040_v2  ;;  %541 = vmatprep.mubr.bf16.mxu1 %v1040_v2 }
  0x30   : > { %850 = vmatpush3.msra.mxu0 %v629_v28 }
  0x31   : > { %851 = vmatprep.subr.mxu0 %v644_v29 }
  0x32   : > { %852 = vmatpush3.msra.mxu0 %v628_v30 }
  0x33   : > { %853 = vmatprep.subr.mxu0 %v643_v31 }
  0x34   : > { %854 = vmatpush3.msra.mxu0 %v627_v32 }
  0x35   : > { %855 = vmatprep.subr.mxu0 %v642_v33 }
  0x36   : > { %833 = vmatmul.mubr.msk.bf16.gmra.mxu0 %vm403_vm0, %v960_v19  ;;  %837 = vmatmul.mubr.msk.bf16.gmra.mxu1 %vm403_vm0, %v960_v19 }
  0x37   : > { %478 = vmatprep.mubr.bf16.mxu0 %v1040_v2  ;;  %551 = vmatprep.mubr.bf16.mxu1 %v1040_v2  ;;  %v289_v2 = vsub.s32 1, %v284_v58 }
  0x38   : > { %856 = vmatpush3.msra.mxu0 %v626_v34 }
  0x39   : > { %857 = vmatprep.subr.mxu0 %v641_v35  ;;  %v1291_v10 = vrot.slane %v281_v1, %v289_v2 }
  0x3a   : > { %858 = vmatpush3.msra.mxu0 %v625_v36 }
  0x3b   : > { %859 = vmatprep.subr.mxu0 %v640_v37 }
  0x3c   : > { %860 = vmatpush3.msra.mxu0 %v624_v38 }
  0x3d   : > { %861 = vmatprep.subr.mxu0 %v639_v39 }
  0x3e   : > { %834 = vmatmul.mubr.msk.bf16.gmra.mxu0 %vm403_vm0, %v961_v20  ;;  %838 = vmatmul.mubr.msk.bf16.gmra.mxu1 %vm403_vm0, %v961_v20 }
  0x3f   : > { %862 = vmatpush3.msra.mxu0 %v623_v40 }
  0x40   : > { %863 = vmatprep.subr.mxu0 %v638_v41 }
  0x41   : > { %864 = vmatpush3.msra.mxu0 %v622_v42 }
  0x42   : > { %865 = vmatprep.subr.mxu0 %v637_v43 }
  0x43   : > { %866 = vmatpush3.msra.mxu0 %v621_v44 }
  0x44   : > { %867 = vmatprep.subr.mxu0 %v636_v45 }
  0x45   : > { %868 = vmatpush3.msra.mxu0 %v620_v46 }
  0x46   : > { %869 = vmatprep.subr.mxu0 %v635_v47 }
  0x47   : > { %870 = vmatpush3.msra.mxu0 %v619_v48 }
  0x48   : > { %871 = vmatprep.subr.mxu0 %v634_v49 }
  0x49   : > { %872 = vmatpush3.msra.mxu0 %v618_v50 }
  0x4a   : > { %873 = vmatprep.subr.mxu0 %v633_v51 }
  0x4b   : > { %874 = vmatpush3.msra.mxu0 %v617_v52 }
  0xe6   : > { %v450_v54 = vpop.f32.mrf.mxu0  ;;  %v523_v55 = vpop.f32.mrf.mxu1 }
  0xe7   : > { %v451_v20 = vadd.f32 %v450_v54, %v1287_v8  ;;  %v524_v21 = vadd.f32 %v523_v55, %v1289_v9 }
  0xe8   : > { %v452_v56 = vpop.f32.mrf.mxu0  ;;  %v525_v57 = vpop.f32.mrf.mxu1 }
  0xe9   : > { %v453_v24 = vadd.f32 %v452_v56, %v1291_v10  ;;  %v526_v25 = vadd.f32 %v525_v57, %v1293_v11  ;;  %v562_v38 = vmul.f32 %v524_v21, %v451_v20 }
  0xea   : > { %v454_v59 = vpop.f32.mrf.mxu0  ;;  %v527_v60 = vpop.f32.mrf.mxu1 }
  0xeb   : > { %v455_v14 = vadd.f32 %v454_v59, %v1287_v8  ;;  %v528_v15 = vadd.f32 %v527_v60, %v1289_v9  ;;  %v563_v42 = vmul.f32 %v526_v25, %v453_v24 }
  0xec   : > { %v456_v61 = vpop.f32.mrf.mxu0  ;;  %v529_v62 = vpop.f32.mrf.mxu1 }
  0xed   : > { %v457_v16 = vadd.f32 %v456_v61, %v1291_v10  ;;  %v530_v17 = vadd.f32 %v529_v62, %v1293_v11  ;;  %v564_v30 = vmul.f32 %v528_v15, %v455_v14 }
  0xee   : > { %v460_v4 = vpop.f32.mrf.mxu0  ;;  %v533_v5 = vpop.f32.mrf.mxu1 }
  0xef   : > { %v461_v22 = vadd.f32 %v460_v4, %v1287_v8  ;;  %v534_v23 = vadd.f32 %v533_v5, %v1289_v9  ;;  %v565_v33 = vmul.f32 %v530_v17, %v457_v16  ;;  %v580_v48 = vadd.f32 %v564_v30, %v562_v38 }
  0xf0   : > { %v462_v6 = vpop.f32.mrf.mxu0  ;;  %v535_v7 = vpop.f32.mrf.mxu1 }
  0xf1   : > { %v463_v26 = vadd.f32 %v462_v6, %v1291_v10  ;;  %v536_v27 = vadd.f32 %v535_v7, %v1293_v11  ;;  %v566_v39 = vmul.f32 %v534_v23, %v461_v22  ;;  %v587_v52 = vadd.f32 %v565_v33, %v563_v42 }
  0xf2   : > { %v464_v12 = vpop.f32.mrf.mxu0  ;;  %v537_v13 = vpop.f32.mrf.mxu1 }
  0xf3   : > { %v465_v31 = vadd.f32 %v464_v12, %v1287_v8  ;;  %v538_v32 = vadd.f32 %v537_v13, %v1289_v9  ;;  %v567_v43 = vmul.f32 %v536_v27, %v463_v26  ;;  %v581_v56 = vadd.f32 %v580_v48, %v566_v39 }
  0xf4   : > { %v466_v18 = vpop.f32.mrf.mxu0  ;;  %v539_v19 = vpop.f32.mrf.mxu1 }
  0xf5   : > { %v467_v34 = vadd.f32 %v466_v18, %v1291_v10  ;;  %v540_v35 = vadd.f32 %v539_v19, %v1293_v11  ;;  %v568_v49 = vmul.f32 %v538_v32, %v465_v31  ;;  %v588_v60 = vadd.f32 %v587_v52, %v567_v43 }
  0xf6   : > { %v470_v28 = vpop.f32.mrf.mxu0  ;;  %v543_v29 = vpop.f32.mrf.mxu1 }
  0xf7   : > { %v471_v40 = vadd.f32 %v470_v28, %v1287_v8  ;;  %v544_v41 = vadd.f32 %v543_v29, %v1289_v9  ;;  %v569_v53 = vmul.f32 %v540_v35, %v467_v34  ;;  %v582_v0 = vadd.f32 %v581_v56, %v568_v49 }
  0xf8   : > { %v472_v36 = vpop.f32.mrf.mxu0  ;;  %v545_v37 = vpop.f32.mrf.mxu1 }
  0xf9   : > { %v473_v44 = vadd.f32 %v472_v36, %v1291_v10  ;;  %v546_v45 = vadd.f32 %v545_v37, %v1293_v11  ;;  %v570_v57 = vmul.f32 %v544_v41, %v471_v40  ;;  %v589_v4 = vadd.f32 %v588_v60, %v569_v53 }
  0xfa   : > { %v474_v46 = vpop.f32.mrf.mxu0  ;;  %v547_v47 = vpop.f32.mrf.mxu1 }
  0xfb   : > { %v475_v50 = vadd.f32 %v474_v46, %v1287_v8  ;;  %v548_v51 = vadd.f32 %v547_v47, %v1289_v9  ;;  %v571_v61 = vmul.f32 %v546_v45, %v473_v44  ;;  %v583_v12 = vadd.f32 %v582_v0, %v570_v57  ;;  %v649_v45 = vld [vmem:[%s1373_s4] sm:$0x1] }
  0xfc   : > { %v476_v54 = vpop.f32.mrf.mxu0  ;;  %v549_v55 = vpop.f32.mrf.mxu1 }
  0xfd   : > { %v477_v58 = vadd.f32 %v476_v54, %v1291_v10  ;;  %v550_v59 = vadd.f32 %v549_v55, %v1293_v11  ;;  %v572_v1 = vmul.f32 %v548_v51, %v475_v50  ;;  %v590_v16 = vadd.f32 %v589_v4, %v571_v61 }
  0xfe   : > { %v480_v62 = vpop.f32.mrf.mxu0  ;;  %v553_v63 = vpop.f32.mrf.mxu1 }
  0xff   : > { %v481_v2 = vadd.f32 %v480_v62, %v1287_v8  ;;  %v554_v3 = vadd.f32 %v553_v63, %v1289_v9  ;;  %v573_v5 = vmul.f32 %v550_v59, %v477_v58  ;;  %v584_v19 = vadd.f32 %v583_v12, %v572_v1 }
 0x100   : > { %v482_v6 = vpop.f32.mrf.mxu0  ;;  %v555_v7 = vpop.f32.mrf.mxu1 }
 0x101   : > { %v574_v13 = vmul.f32 %v554_v3, %v481_v2  ;;  %v483_v14 = vadd.f32 %v482_v6, %v1291_v10  ;;  %v556_v15 = vadd.f32 %v555_v7, %v1293_v11  ;;  %v591_v23 = vadd.f32 %v590_v16, %v573_v5 }
 0x102   : > { %v484_v17 = vpop.f32.mrf.mxu0  ;;  %v557_v18 = vpop.f32.mrf.mxu1 }
 0x103   : > { %v575_v20 = vmul.f32 %v556_v15, %v483_v14  ;;  %v485_v21 = vadd.f32 %v484_v17, %v1287_v8  ;;  %v558_v22 = vadd.f32 %v557_v18, %v1289_v9  ;;  %v585_v26 = vadd.f32 %v584_v19, %v574_v13 }
 0x104   : > { %v486_v24 = vpop.f32.mrf.mxu0  ;;  %v559_v25 = vpop.f32.mrf.mxu1 }
 0x105   : > { %v576_v27 = vmul.f32 %v558_v22, %v485_v21  ;;  %v487_v28 = vadd.f32 %v486_v24, %v1291_v10  ;;  %v560_v29 = vadd.f32 %v559_v25, %v1293_v11  ;;  %v592_v30 = vadd.f32 %v591_v23, %v575_v20 }
 0x107   : > { %v586_v31 = vadd.f32 %v585_v26, %v576_v27  ;;  %v577_v32 = vmul.f32 %v560_v29, %v487_v28 }
 0x109   : > { %v603_v33 = vrot.slane %v586_v31, 4  ;;  %v593_v34 = vadd.f32 %v592_v30, %v577_v32 }
 0x10b   : > { %v604_v35 = vadd.f32 %v603_v33, %v586_v31  ;;  %v609_v36 = vrot.slane %v593_v34, 4 }
 0x10d   : > { %v605_v8 = vrot.slane %v604_v35, 2  ;;  %v610_v37 = vadd.f32 %v609_v36, %v593_v34 }
 0x10f   : > { %v606_v9 = vadd.f32 %v605_v8, %v604_v35  ;;  %v611_v38 = vrot.slane %v610_v37, 2 }
 0x111   : > { %v607_v39 = vrot.slane %v606_v9, 1  ;;  %v612_v40 = vadd.f32 %v611_v38, %v610_v37 }
 0x113   : > { %v613_v41 = vrot.slane %v612_v40, 1  ;;  %v608_v42 = vadd.f32 %v607_v39, %v606_v9 }
 0x115   : > { %v614_v10 = vadd.f32 %v613_v41, %v612_v40  ;;  %v615_v11 = vmul.f32 0.015625, %v608_v42 }
 0x117   : > { %v616_v43 = vmul.f32 0.015625, %v614_v10 }
 0x119   : > { %714 = vmatprep.mubr.f32.mxu0 %v616_v43 }
 0x11a   : > { %715 = vmatmul.mubr.f32.vlgmr.msra.gmra.mxu0 %v615_v11 }
 0x1da   : > { %v875_v44 = vpop.f32.mrf.mxu0 }
 0x1dc   : > { %v876_v46 = vpop.f32.mrf.mxu0 }
 0x1dd   : > { %v877_v47 = vadd.f32 %v876_v46, %v875_v44 }
 0x1df   : > { %v717_v48 = vadd.f32 %v877_v47, %v649_v45 }
 0x1e1   : > { %v720_v49 = vmax.f32 %v717_v48, 0.0 }
 0x1e3   : > { %721 = vst [vmem:[%s239_s9] sm:$0x1] %v720_v49 }
 0x1e4   : > { %975 = shalt.err (!%p972_p5)
}
 0x1e5   : > { %s976_s25 = scalar_lea.hbm %s733_s14, 16  ;;  %s980_s29 = scalar_lea.hbm %s1374_s5, 32 }
 0x1e6   : > { %p977_p6 = scmp.ne.s32.totalorder %s733_s14, %s976_s25  ;;  %p981_p10 = scmp.lt.s32.totalorder %s733_s14, %s1374_s5 }
 0x1e7   : > { %p982_p11 = scmp.lt.s32.totalorder %s980_s29, %s976_s25 }
 0x1e8   : > { %p978_p7 = pnand %p977_p6, %p1112_p4 }
 0x1e9   : > { %p983_p12 = por %p982_p11, %p981_p10 }
 0x1ea   : > { %p979_p9 = pneg %p978_p7 }
 0x1ec   : > { %p984_p13 = pnand %p983_p12, %p979_p9 }
 0x1ee   : > { %987 = shalt.err (!%p984_p13)
}
 0x1ef   : > { %878 = dma.vmem_to_hbm [thread:$0]  (%p1112_p4), %s736_s10, 16, %s733_s14, %s723_s11  }
 0x1f0 PF: > { %p884_p0 = scmp.ge.s32.totalorder %s1038_s23, 2  ;;  %s747_s9 = sand.u32 1, %s1018_s18  }
 0x1f1   : > { %s748_s12 = scalar_lea.sflag [#allocation4], %s747_s9 }
 0x1f2   : > { %p881_p1 = pnand %p884_p0, %p1119_p8 }
 0x1f4   : > { %p882_p2 = pneg %p881_p1 }
 0x1f6   : > { %1013 = dma.done.wait (%p882_p2), %s748_s12, 16  }
 0x1f7   : > { %1015 = vsyncadd (%p882_p2), %s748_s12, 4294967280  ;;  %s18_s23 = sadd.s32 1, %s1038_s23   ;;  %s1377_s18 = smov %s1022_s19 }
 0x1f8   : > { %p15_p3 = scmp.ge.s32.totalorder %s18_s23, 4   ;;  %s1378_s19 = smov %s1026_s20 }
 0x1f9   : > { %s1379_s20 = smov %s1125_s6  ;;  %s1380_s21 = smov %s1034_s22 }
 0x1fa   : > { %s1381_s22 = smov %s1383_s26  ;;  %17 = sbr.rel (!%p15_p3) target bundleno = 4 (0x4), region = 83 }
 0x1ff   :  { %752 = vsyncpa [#allocation4], 1 }
 0x200   :  { %754 = vsyncpa [#allocation4 + $0x1], 1 }

</bundles_post_ra>
